<compile_context>
chip_gen: v7x
topology: tpu7x:2x2x1
jax: 0.10.0
libtpu: 0.0.40
codegen_flags: <defaults>
</compile_context>

<pallas_src>
import functools

import jax
import jax.numpy as jnp
from jax.experimental import pallas as pl
from jax.experimental.pallas import tpu as pltpu


def _round_up(x, m):
    return (x + m - 1) // m * m


# --------------------------------------------------------------------------
# Kernel body: one (tm, tn) output tile, K is the innermost grid axis.
# --------------------------------------------------------------------------
def _linear_kernel(x_ref, w_ref, b_ref, o_ref, acc_ref, *, act_fn):
    k = pl.program_id(2)

    @pl.when(k == 0)
    def _():
        acc_ref[...] = jnp.zeros_like(acc_ref)

    # bf16 x bf16 -> f32 accumulation on the MXU.
    acc_ref[...] += jnp.dot(x_ref[...], w_ref[...],
                            preferred_element_type=jnp.float32)

    @pl.when(k == pl.num_programs(2) - 1)
    def _():
        h = acc_ref[...] + b_ref[...]            # (tm, tn) + (1, tn) broadcast
        o_ref[...] = act_fn(h).astype(o_ref.dtype)


# --------------------------------------------------------------------------
# One-time weight/bias preparation (hoist this out of the per-call path).
# --------------------------------------------------------------------------
def prepare_params(weight, bias=None, *, tn=1024, tk=512,
                   param_dtype=jnp.bfloat16):
    """Prepare nn.Linear params for the kernel.

    weight: (out_features, in_features)  -> padded (Kp, Np) `param_dtype`
    bias:   (out_features,) or None      -> padded (1, Np) f32 row
    Returns a dict reusable across calls (cast/transpose/pad done once).
    """
    N, K = weight.shape
    tn = min(tn, _round_up(N, 128))
    tk = min(tk, _round_up(K, 128))
    Np, Kp = _round_up(N, tn), _round_up(K, tk)

    wt = jnp.asarray(weight, param_dtype).T          # (K, N), bf16
    if (Kp, Np) != (K, N):
        wt = jnp.pad(wt, ((0, Kp - K), (0, Np - N)))

    if bias is None:
        b = jnp.zeros((1, Np), jnp.float32)
    else:
        b = jnp.asarray(bias, jnp.float32).reshape(1, N)
        if Np != N:
            b = jnp.pad(b, ((0, 0), (0, Np - N)))

    return {"wt": wt, "b": b, "N": N, "K": K, "tn": tn, "tk": tk}


# --------------------------------------------------------------------------
# Forward wrapper: act(dropout(x @ W.T + b))   (eval-mode dropout = identity)
# --------------------------------------------------------------------------
def linear_forward(x, weight=None, bias=None, *, act=jax.nn.relu,
                   dropout=0.0, training=False,
                   tm=1024, tn=1024, tk=512, out_dtype=None, params=None):
    """Pallas implementation of Linear.forward.

    x:      (..., in_features)
    weight: (out_features, in_features)   -- nn.Linear layout (or pass
            `params=prepare_params(...)` to reuse prepared weights)
    bias:   (out_features,) or None
    """
    if training and dropout > 0.0:
        # TODO(synk): training-mode dropout (stochastic mask via
        # pltpu.prng_seed / pltpu.prng_random_bits) not implemented.
        raise NotImplementedError("training-mode dropout not implemented")

    if params is None:
        params = prepare_params(weight, bias, tn=tn, tk=tk)
    wt, b = params["wt"], params["b"]
    N, K, tn, tk = params["N"], params["K"], params["tn"], params["tk"]

    orig_shape = x.shape
    in_features = orig_shape[-1]
    assert in_features == K, (in_features, K)
    if out_dtype is None:
        out_dtype = x.dtype

    # Single cast pass over x: bf16 operands, f32 accumulation in-kernel.
    x2 = x.reshape(-1, K).astype(jnp.bfloat16)
    M = x2.shape[0]

    # bf16 sublane packing => tm multiple of 16; lane dims already 128-aligned.
    tm = min(tm, _round_up(M, 16))
    Mp = _round_up(M, tm)
    Kp, Np = wt.shape

    # Pad x only when the clamped tiles do not already divide M/K.
    if (Mp, Kp) != (M, K):
        x2 = jnp.pad(x2, ((0, Mp - M), (0, Kp - K)))

    grid = (Mp // tm, Np // tn, Kp // tk)

    # Size the scoped-VMEM limit from the actual tile footprint
    # (double-buffered in/out + resident accumulator), capped for v7x.
    out_bytes = jnp.dtype(out_dtype).itemsize
    needed = (2 * (tm * tk * 2 + tk * tn * 2 + tm * tn * out_bytes + tn * 4)
              + tm * tn * 4)
    vmem_limit = int(min(max(2 * needed, 32 * 1024 * 1024), 64 * 1024 * 1024))

    out = pl.pallas_call(
        functools.partial(_linear_kernel, act_fn=act),
        out_shape=jax.ShapeDtypeStruct((Mp, Np), out_dtype),
        grid=grid,
        in_specs=[
            pl.BlockSpec((tm, tk), lambda i, j, k: (i, k)),   # x tile (bf16)
            pl.BlockSpec((tk, tn), lambda i, j, k: (k, j)),   # W^T tile (bf16)
            pl.BlockSpec((1, tn), lambda i, j, k: (0, j)),    # bias row (f32)
        ],
        out_specs=pl.BlockSpec((tm, tn), lambda i, j, k: (i, j)),
        scratch_shapes=[pltpu.VMEM((tm, tn), jnp.float32)],
        compiler_params=pltpu.CompilerParams(
            dimension_semantics=("parallel", "parallel", "arbitrary"),
            vmem_limit_bytes=vmem_limit),
    )(x2, wt, b)

    out = out[:M, :N]
    return out.reshape(orig_shape[:-1] + (N,))


if __name__ == "__main__":
    key = jax.random.PRNGKey(0)
    kx, kw, kb = jax.random.split(key, 3)

    # Small shapes implied by the module: (batch, seq, hidden).
    batch, seq, in_features, out_features = 2, 128, 256, 512
    x = jax.random.normal(kx, (batch, seq, in_features), dtype=jnp.float32)
    weight = jax.random.normal(kw, (out_features, in_features),
                               dtype=jnp.float32) * 0.05
    bias = jax.random.normal(kb, (out_features,), dtype=jnp.float32) * 0.05

    # Prepare weights once (hoisted cast/transpose/pad), then call the kernel.
    # Small tiles so the demo exercises the full (2, 2, 2) grid with
    # accumulator init/finalize; defaults (1024/1024/512) suit large shapes.
    params = prepare_params(weight, bias, tn=256, tk=128)
    out = linear_forward(x, act=jax.nn.relu, dropout=0.1, training=False,
                         tm=128, params=params)
    out = jax.block_until_ready(out)

    # Pure-JAX reference of the eval-mode PyTorch forward, using the same
    # bf16-quantized operands the kernel sees (f32 accumulation).
    xb = x.astype(jnp.bfloat16).astype(jnp.float32)
    wb = weight.astype(jnp.bfloat16).astype(jnp.float32)
    ref = jax.nn.relu(
        jnp.einsum("bsk,nk->bsn", xb, wb,
                   precision=jax.lax.Precision.HIGHEST) + bias)

    assert out.shape == ref.shape
    assert jnp.allclose(out, ref, atol=1e-2, rtol=1e-2), \
        float(jnp.max(jnp.abs(out - ref)))

    print("KERNEL_OK")
</pallas_src>

<mosaic_0001>
module attributes {stable_mosaic.version = 11 : i64} {
  func.func @_linear_kernel(%arg0: i32, %arg1: i32, %arg2: i32, %arg3: memref<128x128xbf16, #tpu.memory_space<vmem>>, %arg4: memref<128x256xbf16, #tpu.memory_space<vmem>>, %arg5: memref<1x256xf32, #tpu.memory_space<vmem>>, %arg6: memref<128x256xf32, #tpu.memory_space<vmem>>, %arg7: memref<128x256xf32, #tpu.memory_space<vmem>>) attributes {dimension_semantics = [#tpu.dimension_semantics<parallel>, #tpu.dimension_semantics<parallel>, #tpu.dimension_semantics<arbitrary>], iteration_bounds = array<i64: 2, 2, 2>, scalar_prefetch = 0 : i64, scratch_operands = 1 : i64, tpu.core_type = #tpu.core_type<tc>, window_params = [{transform_indices = @transform_0, window_bounds = array<i64: 128, 128>}, {transform_indices = @transform_1, window_bounds = array<i64: 128, 256>}, {transform_indices = @transform_2, window_bounds = array<i64: 1, 256>}, {transform_indices = @transform_3, window_bounds = array<i64: 128, 256>}]} {
    %c0_i32 = arith.constant 0 : i32
    %0 = arith.cmpi eq, %arg2, %c0_i32 : i32
    %1 = arith.extui %0 : i1 to i32
    %c0_i32_0 = arith.constant 0 : i32
    %2 = arith.cmpi ne, %1, %c0_i32_0 : i32
    scf.if %2 {
      %cst_9 = arith.constant 0.000000e+00 : f32
      %12 = vector.broadcast %cst_9 : f32 to vector<128x256xf32>
      %c0_10 = arith.constant 0 : index
      %c0_11 = arith.constant 0 : index
      %13 = vector.load %arg7[%c0_10, %c0_11] : memref<128x256xf32, #tpu.memory_space<vmem>>, vector<128x256xf32>
      tpu.vector_store %arg7[%c0_10, %c0_11], %12 {strides = array<i32>} : memref<128x256xf32, #tpu.memory_space<vmem>>, vector<128x256xf32>,
    } else {
    }
    %c0 = arith.constant 0 : index
    %c0_1 = arith.constant 0 : index
    %3 = vector.load %arg7[%c0, %c0_1] : memref<128x256xf32, #tpu.memory_space<vmem>>, vector<128x256xf32>
    %c0_2 = arith.constant 0 : index
    %c0_3 = arith.constant 0 : index
    %4 = vector.load %arg3[%c0_2, %c0_3] : memref<128x128xbf16, #tpu.memory_space<vmem>>, vector<128x128xbf16>
    %c0_4 = arith.constant 0 : index
    %c0_5 = arith.constant 0 : index
    %5 = vector.load %arg4[%c0_4, %c0_5] : memref<128x256xbf16, #tpu.memory_space<vmem>>, vector<128x256xbf16>
    %cst = arith.constant dense<0.000000e+00> : vector<128x256xf32>
    %6 = tpu.matmul %4, %5, %cst {dimension_numbers = #tpu.dot_dimension_numbers<[1], [0], [0], [1], [0, 0, 1, 1], [], []>} : vector<128x128xbf16>, vector<128x256xbf16>, vector<128x256xf32> -> vector<128x256xf32>
    %7 = arith.addf %3, %6 : vector<128x256xf32>
    %c0_6 = arith.constant 0 : index
    %c0_7 = arith.constant 0 : index
    %8 = vector.load %arg7[%c0_6, %c0_7] : memref<128x256xf32, #tpu.memory_space<vmem>>, vector<128x256xf32>
    tpu.vector_store %arg7[%c0_6, %c0_7], %7 {strides = array<i32>} : memref<128x256xf32, #tpu.memory_space<vmem>>, vector<128x256xf32>,
    %c1_i32 = arith.constant 1 : i32
    %9 = arith.cmpi eq, %arg2, %c1_i32 : i32
    %10 = arith.extui %9 : i1 to i32
    %c0_i32_8 = arith.constant 0 : i32
    %11 = arith.cmpi ne, %10, %c0_i32_8 : i32
    scf.if %11 {
      %c0_9 = arith.constant 0 : index
      %c0_10 = arith.constant 0 : index
      %12 = vector.load %arg7[%c0_9, %c0_10] : memref<128x256xf32, #tpu.memory_space<vmem>>, vector<128x256xf32>
      %c0_11 = arith.constant 0 : index
      %c0_12 = arith.constant 0 : index
      %13 = vector.load %arg5[%c0_11, %c0_12] : memref<1x256xf32, #tpu.memory_space<vmem>>, vector<1x256xf32>
      %14 = vector.broadcast %13 : vector<1x256xf32> to vector<128x256xf32>
      %15 = arith.addf %12, %14 : vector<128x256xf32>
      %cst_13 = arith.constant 0.000000e+00 : f32
      %16 = vector.broadcast %cst_13 : f32 to vector<128x256xf32>
      %17 = arith.maximumf %15, %16 : vector<128x256xf32>
      %c0_14 = arith.constant 0 : index
      %c0_15 = arith.constant 0 : index
      %18 = vector.load %arg6[%c0_14, %c0_15] : memref<128x256xf32, #tpu.memory_space<vmem>>, vector<128x256xf32>
      tpu.vector_store %arg6[%c0_14, %c0_15], %17 {strides = array<i32>} : memref<128x256xf32, #tpu.memory_space<vmem>>, vector<128x256xf32>,
    } else {
    }
    return
  }
  func.func @transform_0(%arg0: i32, %arg1: i32, %arg2: i32) -> (i32, i32) {
    %c0_i32 = arith.constant 0 : i32
    return %arg0, %arg2 : i32, i32
  }
  func.func @transform_1(%arg0: i32, %arg1: i32, %arg2: i32) -> (i32, i32) {
    %c0_i32 = arith.constant 0 : i32
    return %arg2, %arg1 : i32, i32
  }
  func.func @transform_2(%arg0: i32, %arg1: i32, %arg2: i32) -> (i32, i32) {
    %c0_i32 = arith.constant 0 : i32
    %c0_i32_0 = arith.constant 0 : i32
    return %c0_i32, %arg1 : i32, i32
  }
  func.func @transform_3(%arg0: i32, %arg1: i32, %arg2: i32) -> (i32, i32) {
    %c0_i32 = arith.constant 0 : i32
    return %arg0, %arg1 : i32, i32
  }
}

</mosaic_0001>

<bundles_post_ra>
// kernel: tpu_custom_call.1
= control target key start
LH: loop header
LB: loop body
LE: loop exit
PB: predicated region body
PF: predicated region fallthrough
CT: control target
= control target key end

     0   :  { %s2013_s0 = inlined_call_operand.hbm [shape: bf16[256,256], index: 0, kind: input, shape index: {}]   ;;  %s2014_s1 = inlined_call_operand.hbm [shape: bf16[256,512], index: 1, kind: input, shape index: {}]   ;;  %s2015_s2 = inlined_call_operand.vmem [shape: f32[1,512], index: 2, kind: input, shape index: {}]   ;;  %s2016_s3 = inlined_call_operand.hbm [shape: f32[256,512], index: 3, kind: output, shape index: {}]  }
   0x1   :  { %2031 = sst [smem:[#allocation20_spill]] %s2013_s0 }
   0x2   :  { %2032 = sst [smem:[#allocation21_spill]] %s2015_s2 }
   0x3   :  { %2033 = sst [smem:[#allocation22_spill]] %s2016_s3 }
   0x4   :  { %8 = vsyncpa [#allocation4], 0 }
   0x5   :  { %10 = vsyncpa [#allocation4 + $0x1], 0 }
   0x6   :  { %11 = vsyncpa [#allocation7], 0 }
   0x7   :  { %13 = vsyncpa [#allocation7 + $0x1], 0 }
   0x8   :  { %14 = vsyncpa [#allocation5], 0 }
   0x9   :  { %16 = vsyncpa [#allocation5 + $0x1], 0  ;;  %s1500_s12 = smov 0   ;;  %s1502_s13 = smov 0  }
   0xa   :  { %s1504_s14 = smov 0   ;;  %s1506_s15 = smov 0  }
   0xb   :  { %s1508_s16 = smov 0   ;;  %s1510_s17 = smov 0  }
   0xc   :  { %s1512_s18 = smov 0   ;;  %s1514_s19 = smov 0  }
   0xd   :  { %s1516_s20 = smov 0   ;;  %s1518_s21 = smov 0  }
   0xe   :  { %s1520_s22 = smov 0   ;;  %s1522_s23 = smov 0  }
   0xf   :  { %s1524_s24 = smov 0   ;;  %s1526_s25 = smov 0  }
  0x10   :  { %s1528_s26 = smov 0   ;;  %s1530_s27 = smov 0  }
  0x11 LB: > { %2034 = sst [smem:[#allocation12_spill]] %s1441_s21  ;;  %s980_s28 = sadd.s32 4294967295, %s1465_s27   ;;  %s1465_s27 = sphi %s1530_s27, %s22_s27   ;;  %s1461_s26 = sphi %s1528_s26, %s2094_s26   ;;  %s1457_s25 = sphi %s1526_s25, %s2093_s25   ;;  %s1453_s24 = sphi %s1524_s24, %s2092_s24   ;;  %s1449_s23 = sphi %s1522_s23, %s2091_s23   ;;  %s1445_s22 = sphi %s1520_s22, %s2090_s22   ;;  %s1441_s21 = sphi %s1518_s21, %s2089_s21   ;;  %s1437_s20 = sphi %s1516_s20, %s2088_s20   ;;  %s1433_s19 = sphi %s1514_s19, %s2087_s19   ;;  %s1429_s18 = sphi %s1512_s18, %s2086_s18   ;;  %s1425_s17 = sphi %s1510_s17, %s2085_s17   ;;  %s1421_s16 = sphi %s1508_s16, %s2084_s16   ;;  %s1417_s15 = sphi %s1506_s15, %s2083_s15   ;;  %s1413_s14 = sphi %s1504_s14, %s2082_s14   ;;  %s1409_s13 = sphi %s1502_s13, %s2081_s13   ;;  %s1405_s12 = sphi %s1500_s12, %s2079_s12  }
  0x12   : > { %2035 = sst [smem:[#allocation13_spill]] %s1445_s22  ;;  %s34_s29 = sadd.s32 1, %s1453_s24 }
  0x13   : > { %2036 = sst [smem:[#allocation14_spill]] %s1449_s23  ;;  %p1580_p0 = scmp.ge.s32.totalorder %s34_s29, 2 }
  0x14   : > { %2037 = sst [smem:[#allocation15_spill]] %s1461_s26  ;;  %p57_p1 = scmp.ne.s32.totalorder %s1437_s20, %s1433_s19 }
  0x15   : > { %s2096_s29 = smov (%p1580_p0, %s34_s29), 0  ;;  %p2020_p2 = scmp.eq.s32.totalorder %s1465_s27, 0 }
  0x16   : > { %2039 = sst [smem:[#allocation16_spill]] %s2096_s29  ;;  %p63_p3 = scmp.ne.s32.totalorder %s1433_s19, %s1429_s18 }
  0x17   : > { %s1596_s6 = ssub.s32 %s1453_s24, %s2096_s29  ;;  %p1598_p4 = scmp.eq.s32.totalorder %s980_s28, 0 }
  0x18   : > { %p1604_p5 = por %p2020_p2, %p57_p1  ;;  %p1608_p6 = scmp.eq.s32.totalorder %s980_s28, 7 }
  0x19   : > { %s2040_s7 = scalar_select %p1598_p4, 1, 0 }
  0x1a   : > { %s2042_s9 = scalar_select %p1608_p6, 1, 0 }
  0x1b   : > { %p1614_p7 = por %p1598_p4, %p63_p3  ;;  %p2019_p8 = scmp.lt.s32.totalorder %s1465_s27, 8 }
  0x1c   : > { %s169_s11 = sand.u32 1, %s1437_s20   ;;  %s1031_s5 = sshll.u32 %s1461_s26, 5 }
  0x1d   : > { %s2043_s10 = scalar_select %p1614_p7, 1, 0 }
  0x1e   : > { %s984_s18 = sshll.u32 %s169_s11, 6  ;;  %s179_s4 = sadd.s32 %s1453_s24, %s1031_s5 }
  0x1f   : > { %s173_s29 = scalar_lea.vmem [#allocation3], %s984_s18  ;;  %s987_s23 = sshll.u32 %s179_s4, 6 }
  0x20   : > { %s182_s3 = sshll.u32 %s173_s29, 4  ;;  %s2044_s0 = sld [smem:[#allocation20_spill]]  ;;  %s1622_s3 = int_to_ptr.vmem [resolvable:$true] %s182_s3 }
  0x21   : > { %p1633_p9 = pnand %p2019_p8, %p1604_p5  ;;  %s1637_s29 = scalar_lea.sflag [#allocation4], %s169_s11 }
  0x23   : > { %p1241_p11 = pneg %p1633_p9 }
  0x26   : > { %s1627_s2 = scalar_lea.hbm %s2044_s0, %s987_s23  ;;  %s1244_s5 = scalar_lea.hbm %s2044_s0, 4096 }
  0x27   : > { %s1239_s4 = scalar_lea.hbm %s1627_s2, 1024  ;;  %p1245_p1 = scmp.lt.u32.totalorder %s1627_s2, %s2044_s0 }
  0x28   : > { %p1240_p10 = scmp.ne.s32.totalorder %s1627_s2, %s1239_s4  ;;  %p1246_p3 = scmp.lt.u32.totalorder %s1244_s5, %s1239_s4 }
  0x29   : > { %p1248_p8 = scmp.lt.u32.totalorder %s1239_s4, %s1627_s2 }
  0x2a   : > { %p1242_p12 = pnand %p1241_p11, %p1240_p10  ;;  %p1247_p5 = por %p1246_p3, %p1245_p1 }
  0x2c   : > { %p1243_p13 = pneg %p1242_p12  ;;  %p1249_p2 = por %p1248_p8, %p1247_p5 }
  0x2e   : > { %p1250_p7 = pnand %p1249_p2, %p1243_p13 }
  0x30   : > { %1253 = shalt.err (!%p1250_p7)
}
  0x31   : > { %s1254_s11 = scalar_lea.vmem %s1622_s3, 1024  ;;  %s1467_s28 = smov [#allocation3]  }
  0x32   : > { %p1255_p10 = scmp.ne.s32.totalorder %s1622_s3, %s1254_s11  ;;  %s1259_s21 = sshll.u32 %s1467_s28, 4  ;;  %s1260_s21 = int_to_ptr.vmem [resolvable:$false] %s1259_s21 }
  0x33   : > { %s1261_s23 = scalar_lea.vmem %s1260_s21, 2048  ;;  %p1262_p4 = scmp.lt.s32.totalorder %s1622_s3, %s1260_s21 }
  0x34   : > { %p1257_p12 = pnand %p1255_p10, %p1241_p11  ;;  %p1263_p1 = scmp.lt.s32.totalorder %s1261_s23, %s1254_s11 }
  0x36   : > { %p1258_p6 = pneg %p1257_p12  ;;  %p1264_p3 = por %p1263_p1, %p1262_p4 }
  0x38   : > { %p1265_p8 = pnand %p1264_p3, %p1258_p6 }
  0x3a   : > { %1268 = shalt.err (!%p1265_p8)
}
  0x3b   : > { %s2023_s4 = smov 128   ;;  %s1469_s5 = smov 64  }
  0x3c   : > { %s1470_s8 = smov 4   ;;  %p993_p2 = scmp.ge.s32.totalorder %s1465_s27, 1 }
  0x3d   : > { %1059 = dma.hbm_to_vmem [thread:$0]  (!%p1633_p9), %s1627_s2, 1024, %s1622_s3, %s1637_s29, %s2023_s4, %s1469_s5, %s1470_s8  }
  0x3e   : > { %p222_p4 = scmp.lt.s32.totalorder %s1465_s27, 9  ;;  %s981_s11 = sadd.s32 4294967294, %s1465_s27  }
  0x3f   : > { %s37_s28 = sadd.s32 1, %s1457_s25  ;;  %s78_s21 = sadd.s32 1, %s1425_s17 }
  0x40   : > { %p1668_p6 = pnand %p993_p2, %p222_p4  ;;  %s2098_s28 = smov (!%p1580_p0, %s37_s28), %s1457_s25 }
  0x41   : > { %p85_p7 = scmp.ne.s32.totalorder %s1425_s17, %s1421_s16  ;;  %p91_p9 = scmp.ne.s32.totalorder %s1421_s16, %s1417_s15 }
  0x42   : > { %p39_p11 = scmp.ge.s32.totalorder %s2098_s28, 2  ;;  %s132_s2 = sadd.s32 1, %s1413_s14 }
  0x43   : > { %p2047_p13 = scmp.eq.s32.totalorder %s1465_s27, 0  ;;  %p2049_p10 = scmp.ne.s32.totalorder %s2040_s7, 0 }
  0x44   : > { %s2100_s28 = smov (%p39_p11, %s2098_s28), 0  ;;  %s2052_s30 = sadd.s32 1, %s1461_s26 }
  0x45   : > { %p1685_p5 = por %p85_p7, %p2047_p13  ;;  %p1691_p12 = por %p91_p9, %p2049_p10 }
  0x46   : > { %2051 = sst [smem:[#allocation17_spill]] %s2100_s28  ;;  %s2102_s30 = smov (!%p39_p11, %s2052_s30), %s1461_s26 }
  0x47   : > { %s2050_s22 = scalar_select %p1691_p12, 1, 0 }
  0x48   : > { %s74_s15 = ssub.s32 %s1457_s25, %s2100_s28  ;;  %p142_p0 = scmp.ne.s32.totalorder %s1413_s14, %s1409_s13 }
  0x49   : > { %p43_p1 = scmp.ge.s32.totalorder %s2102_s30, 2  ;;  %s75_s29 = sor.u32 %s74_s15, %s1596_s6 }
  0x4a   : > { %p76_p3 = scmp.eq.s32.totalorder %s75_s29, 0  ;;  %p2053_p8 = scmp.ne.s32.totalorder %s2042_s9, 0 }
  0x4b   : > { %s2104_s30 = smov (%p43_p1, %s2102_s30), 0  ;;  %p148_p4 = scmp.ne.s32.totalorder %s1409_s13, %s1405_s12 }
  0x4c   : > { %p1707_p2 = por %p2053_p8, %p142_p0  ;;  %2056 = sst [smem:[#allocation19_spill]] %s2104_s30 }
  0x4d   : > { %s1714_s23 = scalar_select %p76_p3, %s1425_s17, %s78_s21  }
  0x4e   : > { %s2054_s7 = scalar_select %p1707_p2, 1, 0 }
  0x4f   : > { %s45_s5 = ssub.s32 %s1461_s26, %s2104_s30  ;;  %p149_p11 = scmp.eq.s32.totalorder %s981_s11, 7 }
  0x50   : > { %2055 = sst [smem:[#allocation18_spill]] %s2054_s7  ;;  %s47_s8 = sor.u32 %s1596_s6, %s45_s5 }
  0x51   : > { %s129_s4 = sor.u32 %s74_s15, %s45_s5  ;;  %p48_p7 = scmp.eq.s32.totalorder %s47_s8, 0 }
  0x52   : > { %p130_p9 = scmp.eq.s32.totalorder %s129_s4, 0  ;;  %s192_s9 = sand.u32 1, %s1425_s17  }
  0x53   : > { %s2057_s29 = sadd.s32 1, %s1437_s20  ;;  %p1730_p13 = por %p149_p11, %p148_p4 }
  0x54   : > { %s1725_s0 = scalar_select %p48_p7, %s1437_s20, %s2057_s29  }
  0x55   : > { %s1728_s28 = scalar_select %p130_p9, %s1413_s14, %s132_s2  }
  0x56   : > { %s2058_s7 = scalar_select %p1730_p13, 1, 0 }
  0x57   : > { %s988_s21 = sshll.u32 %s192_s9, 7  ;;  %s990_s30 = sshll.u32 %s1457_s25, 1 }
  0x58   : > { %s1032_s26 = sshll.u32 %s1453_s24, 6  ;;  %s196_s15 = scalar_lea.vmem [#allocation6], %s988_s21 }
  0x59   : > { %s203_s6 = sadd.s32 %s1032_s26, %s990_s30  ;;  %s206_s5 = sshll.u32 %s196_s15, 4  ;;  %s1736_s5 = int_to_ptr.vmem [resolvable:$true] %s206_s5 }
  0x5a   : > { %s992_s8 = sshll.u32 %s203_s6, 6  ;;  %p2059_p10 = scmp.lt.s32.totalorder %s1465_s27, 8 }
  0x5b   : > { %s1741_s29 = scalar_lea.hbm %s2014_s1, %s992_s8  ;;  %s1751_s26 = scalar_lea.sflag [#allocation7], %s192_s9 }
  0x5c   : > { %p1747_p0 = pnand %p2059_p10, %p1685_p5  ;;  %s1269_s30 = scalar_lea.hbm %s1741_s29, 2048 }
  0x5d   : > { %p1270_p1 = scmp.ne.s32.totalorder %s1741_s29, %s1269_s30  ;;  %s1274_s6 = scalar_lea.hbm %s2014_s1, 8192 }
  0x5e   : > { %p1271_p3 = pneg %p1747_p0  ;;  %p1275_p5 = scmp.lt.u32.totalorder %s1741_s29, %s2014_s1 }
  0x5f   : > { %p1276_p7 = scmp.lt.u32.totalorder %s1274_s6, %s1269_s30  ;;  %p1278_p11 = scmp.lt.u32.totalorder %s1269_s30, %s1741_s29 }
  0x60   : > { %p1272_p8 = pnand %p1271_p3, %p1270_p1 }
  0x61   : > { %p1277_p9 = por %p1276_p7, %p1275_p5 }
  0x62   : > { %p1273_p4 = pneg %p1272_p8 }
  0x63   : > { %p1279_p10 = por %p1278_p11, %p1277_p9 }
  0x65   : > { %p1280_p13 = pnand %p1279_p10, %p1273_p4 }
  0x67   : > { %1283 = shalt.err (!%p1280_p13)
}
  0x68   : > { %s1284_s9 = scalar_lea.vmem %s1736_s5, 2048  ;;  %s1471_s4 = smov [#allocation6]  }
  0x69   : > { %p1285_p1 = scmp.ne.s32.totalorder %s1736_s5, %s1284_s9  ;;  %s1289_s11 = sshll.u32 %s1471_s4, 4  ;;  %s1290_s11 = int_to_ptr.vmem [resolvable:$false] %s1289_s11 }
  0x6a   : > { %s1291_s3 = scalar_lea.vmem %s1290_s11, 4096  ;;  %p1292_p12 = scmp.lt.s32.totalorder %s1736_s5, %s1290_s11 }
  0x6b   : > { %p1287_p8 = pnand %p1285_p1, %p1271_p3  ;;  %p1293_p5 = scmp.lt.s32.totalorder %s1291_s3, %s1284_s9 }
  0x6d   : > { %p1288_p2 = pneg %p1287_p8  ;;  %p1294_p7 = por %p1293_p5, %p1292_p12 }
  0x6f   : > { %p1295_p9 = pnand %p1294_p7, %p1288_p2 }
  0x71   : > { %1298 = shalt.err (!%p1295_p9)
}
  0x72   : > { %s1472_s30 = smov 256   ;;  %s1473_s21 = smov 8  }
  0x73   : > { %s2061_s6 = smov 128   ;;  %226 = sbr.rel (%p1668_p6) target bundleno = 476 (0x1dc), region = 32 }
  0x74   : > { %1062 = dma.hbm_to_vmem [thread:$0]  (!%p1747_p0), %s1741_s29, 2048, %s1736_s5, %s1751_s26, %s1472_s30, %s2061_s6, %s1473_s21  }
  0x75   : > { %s228_s15 = sand.u32 (!%p1668_p6), 1, %s1433_s19   ;;  %p2062_p12 = scmp.ne.s32.totalorder (!%p1668_p6), %s2043_s10, 0 }
  0x76   : > { %s994_s8 = sshll.u32 (!%p1668_p6), %s228_s15, 6  ;;  %s229_s9 = scalar_lea.sflag (!%p1668_p6), [#allocation4], %s228_s15 }
  0x77   : > { %s1783_s4 = scalar_lea.vmem (!%p1668_p6), [#allocation3], %s994_s8 }
  0x7a   : > { %1392 = dma.done.wait (%p2062_p12), %s229_s9, 1024  }
  0x7b   : > { %1394 = vsyncadd (%p2062_p12), %s229_s9, 4294966272  ;;  %s237_s2 = sand.u32 1, %s1421_s16   ;;  %p2063_p6 = scmp.ne.s32.totalorder %s2050_s22, 0 }
  0x7c   : > { %s995_s11 = sshll.u32 %s237_s2, 7  ;;  %s238_s5 = scalar_lea.sflag [#allocation7], %s237_s2 }
  0x7d   : > { %s1790_s29 = scalar_lea.vmem [#allocation6], %s995_s11 }
  0x7e   : > { %1396 = dma.done.wait (%p2063_p6), %s238_s5, 2048  }
  0x7f   : > { %1398 = vsyncadd (%p2063_p6), %s238_s5, 4294965248  ;;  %s2064_s18 = sld [smem:[#allocation13_spill]]  ;;  %s270_s26 = sand.u32 1, %s1409_s13  }
  0x80   : > { %s996_s10 = sshll.u32 %s270_s26, 8  ;;  %s2065_s15 = sld [smem:[#allocation21_spill]] }
  0x81   : > { %s1810_s22 = scalar_lea.vmem [#allocation8], %s996_s10  ;;  %s2066_s9 = sld [smem:[#allocation12_spill]] }
  0x85   : > { %s1798_s3 = sshll.u32 %s2064_s18, 1 }
  0x86   : > { %p277_p2 = scmp.lt.s32.totalorder %s1798_s3, 3 }
  0x87   : > { %p998_p13 = scmp.ne.s32.totalorder %s2066_s9, 0 }
  0x88   : > { %s1804_s30 = scalar_select %p277_p2, %s1798_s3, 3 }
  0x89   : > { %287 = sbr.rel (%p998_p13) target bundleno = 154 (0x9a), region = 44  ;;  %v1474_v0 = vmov (!%p998_p13), 0.0  }
  0x8a   : > { %s279_s8 = scalar_lea.vmem %s2065_s15, %s1804_s30  ;;  %288 = vst [vmem:[#allocation2] sm:$0xff] (!%p998_p13), %v1474_v0  ;;  %289 = vst [vmem:[#allocation2 + $0x8] sm:$0xff] (!%p998_p13), %v1474_v0 }
  0x8b   : > { %290 = vst [vmem:[#allocation2 + $0x10] sm:$0xff] (!%p998_p13), %v1474_v0  ;;  %291 = vst [vmem:[#allocation2 + $0x18] sm:$0xff] (!%p998_p13), %v1474_v0 }
  0x8c   : > { %292 = vst [vmem:[#allocation2 + $0x20] sm:$0xff] (!%p998_p13), %v1474_v0  ;;  %293 = vst [vmem:[#allocation2 + $0x28] sm:$0xff] (!%p998_p13), %v1474_v0 }
  0x8d   : > { %294 = vst [vmem:[#allocation2 + $0x30] sm:$0xff] (!%p998_p13), %v1474_v0  ;;  %295 = vst [vmem:[#allocation2 + $0x38] sm:$0xff] (!%p998_p13), %v1474_v0 }
  0x8e   : > { %296 = vst [vmem:[#allocation2 + $0x40] sm:$0xff] (!%p998_p13), %v1474_v0  ;;  %297 = vst [vmem:[#allocation2 + $0x48] sm:$0xff] (!%p998_p13), %v1474_v0 }
  0x8f   : > { %298 = vst [vmem:[#allocation2 + $0x50] sm:$0xff] (!%p998_p13), %v1474_v0  ;;  %299 = vst [vmem:[#allocation2 + $0x58] sm:$0xff] (!%p998_p13), %v1474_v0 }
  0x90   : > { %300 = vst [vmem:[#allocation2 + $0x60] sm:$0xff] %v1474_v0  ;;  %301 = vst [vmem:[#allocation2 + $0x68] sm:$0xff] %v1474_v0 }
  0x91   : > { %302 = vst [vmem:[#allocation2 + $0x70] sm:$0xff] %v1474_v0  ;;  %303 = vst [vmem:[#allocation2 + $0x78] sm:$0xff] %v1474_v0 }
  0x92   : > { %304 = vst [vmem:[#allocation2 + $0x80] sm:$0xff] %v1474_v0  ;;  %305 = vst [vmem:[#allocation2 + $0x88] sm:$0xff] %v1474_v0 }
  0x93   : > { %306 = vst [vmem:[#allocation2 + $0x90] sm:$0xff] %v1474_v0  ;;  %307 = vst [vmem:[#allocation2 + $0x98] sm:$0xff] %v1474_v0 }
  0x94   : > { %308 = vst [vmem:[#allocation2 + $0xa0] sm:$0xff] %v1474_v0  ;;  %309 = vst [vmem:[#allocation2 + $0xa8] sm:$0xff] %v1474_v0 }
  0x95   : > { %310 = vst [vmem:[#allocation2 + $0xb0] sm:$0xff] %v1474_v0  ;;  %311 = vst [vmem:[#allocation2 + $0xb8] sm:$0xff] %v1474_v0 }
  0x96   : > { %312 = vst [vmem:[#allocation2 + $0xc0] sm:$0xff] %v1474_v0  ;;  %313 = vst [vmem:[#allocation2 + $0xc8] sm:$0xff] %v1474_v0 }
  0x97   : > { %314 = vst [vmem:[#allocation2 + $0xd0] sm:$0xff] %v1474_v0  ;;  %315 = vst [vmem:[#allocation2 + $0xd8] sm:$0xff] %v1474_v0 }
  0x98   : > { %316 = vst [vmem:[#allocation2 + $0xe0] sm:$0xff] %v1474_v0  ;;  %317 = vst [vmem:[#allocation2 + $0xe8] sm:$0xff] %v1474_v0 }
  0x99   : > { %318 = vst [vmem:[#allocation2 + $0xf0] sm:$0xff] %v1474_v0  ;;  %319 = vst [vmem:[#allocation2 + $0xf8] sm:$0xff] %v1474_v0 }
  0x9a PF: > { %v1207_v1 = vld [vmem:[%s1790_s29 + $0x4] ss:$8 sps:$4 sm:$0xff]   ;;  %v1209_v2 = vld [vmem:[%s1790_s29] ss:$8 sps:$4 sm:$0xff]   ;;  %v1475_v3 = vmov 0   ;;  %v1235_v22 = vld [vmem:[%s1783_s4 + $0x10] sm:$0xff]  }
  0x9b   : > { %544 = vmatprep.mubr.bf16.mxu0 %v1475_v3  ;;  %584 = vmatprep.mubr.bf16.mxu1 %v1475_v3  ;;  %v1210_v4 = vld [vmem:[%s1790_s29 + $0x14] ss:$8 sps:$4 sm:$0xff]   ;;  %v1212_v5 = vld [vmem:[%s1790_s29 + $0x10] ss:$8 sps:$4 sm:$0xff]   ;;  %v1213_v6 = vld [vmem:[%s1790_s29 + $0x24] ss:$8 sps:$4 sm:$0xff]  }
  0x9c   : > { %512 = vmatprep.subr.bf16.mxu0 %v1207_v1  ;;  %1034 = vmatprep.subr.bf16.mxu1 %v1207_v1  ;;  %v1215_v7 = vld [vmem:[%s1790_s29 + $0x20] ss:$8 sps:$4 sm:$0xff]   ;;  %v1216_v8 = vld [vmem:[%s1790_s29 + $0x34] ss:$8 sps:$4 sm:$0xff]   ;;  %v1218_v9 = vld [vmem:[%s1790_s29 + $0x30] ss:$8 sps:$4 sm:$0xff]  }
  0x9d   : > { %513 = vmatpush1.bf16.msra.mxu0 %v1209_v2  ;;  %1042 = vmatpush1.bf16.msra.mxu1 %v1209_v2  ;;  %v1219_v10 = vld [vmem:[%s1790_s29 + $0x44] ss:$8 sps:$4 sm:$0xff]   ;;  %v1221_v11 = vld [vmem:[%s1790_s29 + $0x40] ss:$8 sps:$4 sm:$0xff]   ;;  %v1222_v12 = vld [vmem:[%s1790_s29 + $0x54] ss:$8 sps:$4 sm:$0xff]  }
  0x9e   : > { %514 = vmatprep.subr.bf16.mxu0 %v1210_v4  ;;  %1035 = vmatprep.subr.bf16.mxu1 %v1210_v4  ;;  %v1224_v13 = vld [vmem:[%s1790_s29 + $0x50] ss:$8 sps:$4 sm:$0xff]   ;;  %v1225_v14 = vld [vmem:[%s1790_s29 + $0x64] ss:$8 sps:$4 sm:$0xff]   ;;  %v1227_v15 = vld [vmem:[%s1790_s29 + $0x60] ss:$8 sps:$4 sm:$0xff]  }
  0x9f   : > { %v1228_v16 = vld [vmem:[%s1790_s29 + $0x74] ss:$8 sps:$4 sm:$0xff]   ;;  %v1230_v17 = vld [vmem:[%s1790_s29 + $0x70] ss:$8 sps:$4 sm:$0xff]   ;;  %v1231_v18 = vld [vmem:[%s1783_s4] sm:$0xff]  }
  0xa0   : > { %v1232_v19 = vld [vmem:[%s1783_s4 + $0x20] sm:$0xff]   ;;  %v1233_v20 = vld [vmem:[%s1783_s4 + $0x8] sm:$0xff]   ;;  %v1236_v23 = vld [vmem:[%s1783_s4 + $0x30] sm:$0xff]  }
  0xa1   : > { %515 = vmatpush1.bf16.msra.mxu0 %v1212_v5  ;;  %1043 = vmatpush1.bf16.msra.mxu1 %v1212_v5  ;;  %v1234_v21 = vld [vmem:[%s1783_s4 + $0x28] sm:$0xff]   ;;  %v1237_v24 = vld [vmem:[%s1783_s4 + $0x18] sm:$0xff]   ;;  %v320_v26 = vld [vmem:[#allocation2] sm:$0xff] }
  0xa2   : > { %516 = vmatprep.subr.bf16.mxu0 %v1213_v6  ;;  %1036 = vmatprep.subr.bf16.mxu1 %v1213_v6  ;;  %v1238_v25 = vld [vmem:[%s1783_s4 + $0x38] sm:$0xff]   ;;  %v336_v27 = vld [vmem:[#allocation2 + $0x80] sm:$0xff]  ;;  %v321_v28 = vld [vmem:[#allocation2 + $0x8] sm:$0xff]  ;;  %s2067_s4 = sld [smem:[#allocation12_spill]] }
  0xa3   : > { %v337_v29 = vld [vmem:[#allocation2 + $0x88] sm:$0xff]  ;;  %v322_v32 = vld [vmem:[#allocation2 + $0x10] sm:$0xff]  ;;  %v323_v38 = vld [vmem:[#allocation2 + $0x18] sm:$0xff] }
  0xa4   : > { %v338_v33 = vld [vmem:[#allocation2 + $0x90] sm:$0xff]  ;;  %v339_v39 = vld [vmem:[#allocation2 + $0x98] sm:$0xff]  ;;  %v324_v50 = vld [vmem:[#allocation2 + $0x20] sm:$0xff] }
  0xa5   : > { %517 = vmatpush1.bf16.msra.mxu0 %v1215_v7  ;;  %1044 = vmatpush1.bf16.msra.mxu1 %v1215_v7  ;;  %v340_v51 = vld [vmem:[#allocation2 + $0xa0] sm:$0xff]  ;;  %v325_v52 = vld [vmem:[#allocation2 + $0x28] sm:$0xff]  ;;  %v326_v56 = vld [vmem:[#allocation2 + $0x30] sm:$0xff] }
  0xa6   : > { %518 = vmatprep.subr.bf16.mxu0 %v1216_v8  ;;  %1037 = vmatprep.subr.bf16.mxu1 %v1216_v8  ;;  %v341_v53 = vld [vmem:[#allocation2 + $0xa8] sm:$0xff]  ;;  %v342_v57 = vld [vmem:[#allocation2 + $0xb0] sm:$0xff]  ;;  %v327_v62 = vld [vmem:[#allocation2 + $0x38] sm:$0xff] }
  0xa7   : > { %v343_v63 = vld [vmem:[#allocation2 + $0xb8] sm:$0xff] }
  0xa8   : > { %p1023_p0 = scmp.ne.s32.totalorder %s2067_s4, 1 }
  0xa9   : > { %519 = vmatpush1.bf16.msra.mxu0 %v1218_v9  ;;  %1045 = vmatpush1.bf16.msra.mxu1 %v1218_v9 }
  0xaa   : > { %520 = vmatprep.subr.bf16.mxu0 %v1219_v10  ;;  %1038 = vmatprep.subr.bf16.mxu1 %v1219_v10  ;;  %v328_v10 = vld [vmem:[#allocation2 + $0x40] sm:$0xff] }
  0xad   : > { %521 = vmatpush1.bf16.msra.mxu0 %v1221_v11  ;;  %1046 = vmatpush1.bf16.msra.mxu1 %v1221_v11  ;;  %v344_v11 = vld [vmem:[#allocation2 + $0xc0] sm:$0xff] }
  0xae   : > { %522 = vmatprep.subr.bf16.mxu0 %v1222_v12  ;;  %1039 = vmatprep.subr.bf16.mxu1 %v1222_v12  ;;  %v329_v12 = vld [vmem:[#allocation2 + $0x48] sm:$0xff] }
  0xb1   : > { %523 = vmatpush1.bf16.msra.mxu0 %v1224_v13  ;;  %1047 = vmatpush1.bf16.msra.mxu1 %v1224_v13  ;;  %v345_v13 = vld [vmem:[#allocation2 + $0xc8] sm:$0xff] }
  0xb2   : > { %524 = vmatprep.subr.bf16.mxu0 %v1225_v14  ;;  %1040 = vmatprep.subr.bf16.mxu1 %v1225_v14 }
  0xb5   : > { %525 = vmatpush1.bf16.msra.mxu0 %v1227_v15  ;;  %1048 = vmatpush1.bf16.msra.mxu1 %v1227_v15 }
  0xb6   : > { %526 = vmatprep.subr.bf16.mxu0 %v1228_v16  ;;  %1041 = vmatprep.subr.bf16.mxu1 %v1228_v16  ;;  %v330_v16 = vld [vmem:[#allocation2 + $0x50] sm:$0xff] }
  0xb9   : > { %527 = vmatpush1.bf16.msra.mxu0 %v1230_v17  ;;  %1049 = vmatpush1.bf16.msra.mxu1 %v1230_v17  ;;  %v346_v17 = vld [vmem:[#allocation2 + $0xd0] sm:$0xff] }
  0xbc   : > { %545 = vmatmul.mubr.bf16.vlgmr.msra.gmra.mrb[0].mxu0 %v1231_v18  ;;  %585 = vmatmul.mubr.bf16.vlgmr.msra.gmra.mrb[0].mxu1 %v1232_v19 }
  0xbd   : > { %554 = vmatprep.mubr.bf16.mxu0 %v1475_v3  ;;  %594 = vmatprep.mubr.bf16.mxu1 %v1475_v3 }
  0xc4   : > { %555 = vmatmul.mubr.bf16.gmra.mrb[4].mxu0 %v1233_v20  ;;  %595 = vmatmul.mubr.bf16.gmra.mrb[4].mxu1 %v1234_v21 }
  0xc5   : > { %564 = vmatprep.mubr.bf16.mxu0 %v1475_v3  ;;  %604 = vmatprep.mubr.bf16.mxu1 %v1475_v3 }
  0xcc   : > { %565 = vmatmul.mubr.bf16.gmra.mrb[8].mxu0 %v1235_v22  ;;  %605 = vmatmul.mubr.bf16.gmra.mrb[8].mxu1 %v1236_v23  ;;  %v331_v22 = vld [vmem:[#allocation2 + $0x58] sm:$0xff] }
  0xcd   : > { %574 = vmatprep.mubr.bf16.mxu0 %v1475_v3  ;;  %614 = vmatprep.mubr.bf16.mxu1 %v1475_v3  ;;  %v347_v23 = vld [vmem:[#allocation2 + $0xd8] sm:$0xff] }
  0xd4   : > { %575 = vmatmul.mubr.bf16.gmra.mrb[12].mxu0 %v1237_v24  ;;  %615 = vmatmul.mubr.bf16.gmra.mrb[12].mxu1 %v1238_v25 }
 0x18f   : > { %v546_v30 = vpop.f32.mrb[0].mxu0  ;;  %v586_v31 = vpop.f32.mrb[0].mxu1 }
 0x190   : > { %v625_v34 = vadd.f32 %v546_v30, %v320_v26  ;;  %v641_v35 = vadd.f32 %v586_v31, %v336_v27  ;;  %v548_v36 = vpop.f32.mrb[1].mxu0  ;;  %v588_v37 = vpop.f32.mrb[1].mxu1 }
 0x191   : > { %v626_v40 = vadd.f32 %v548_v36, %v321_v28  ;;  %v642_v41 = vadd.f32 %v588_v37, %v337_v29  ;;  %v550_v42 = vpop.f32.mrb[2].mxu0  ;;  %v590_v43 = vpop.f32.mrb[2].mxu1  ;;  %v333_v36 = vld [vmem:[#allocation2 + $0x68] sm:$0xff] }
 0x192   : > { %657 = vst [vmem:[#allocation2] sm:$0xff] %v625_v34  ;;  %673 = vst [vmem:[#allocation2 + $0x80] sm:$0xff] %v641_v35  ;;  %v627_v44 = vadd.f32 %v550_v42, %v322_v32  ;;  %v643_v45 = vadd.f32 %v590_v43, %v338_v33  ;;  %v552_v46 = vpop.f32.mrb[3].mxu0  ;;  %v592_v47 = vpop.f32.mrb[3].mxu1  ;;  %v332_v34 = vld [vmem:[#allocation2 + $0x60] sm:$0xff]  ;;  %v349_v37 = vld [vmem:[#allocation2 + $0xe8] sm:$0xff] }
 0x193   : > { %658 = vst [vmem:[#allocation2 + $0x8] sm:$0xff] %v626_v40  ;;  %674 = vst [vmem:[#allocation2 + $0x88] sm:$0xff] %v642_v41  ;;  %v628_v48 = vadd.f32 %v552_v46, %v323_v38  ;;  %v644_v49 = vadd.f32 %v592_v47, %v339_v39  ;;  %v348_v35 = vld [vmem:[#allocation2 + $0xe0] sm:$0xff]  ;;  %v334_v40 = vld [vmem:[#allocation2 + $0x70] sm:$0xff] }
 0x194   : > { %659 = vst [vmem:[#allocation2 + $0x10] sm:$0xff] %v627_v44  ;;  %675 = vst [vmem:[#allocation2 + $0x90] sm:$0xff] %v643_v45  ;;  %v350_v41 = vld [vmem:[#allocation2 + $0xf0] sm:$0xff]  ;;  %v335_v46 = vld [vmem:[#allocation2 + $0x78] sm:$0xff] }
 0x195   : > { %660 = vst [vmem:[#allocation2 + $0x18] sm:$0xff] %v628_v48  ;;  %676 = vst [vmem:[#allocation2 + $0x98] sm:$0xff] %v644_v49  ;;  %v351_v47 = vld [vmem:[#allocation2 + $0xf8] sm:$0xff] }
 0x197   : > { %v556_v54 = vpop.f32.mrb[4].mxu0  ;;  %v596_v55 = vpop.f32.mrb[4].mxu1 }
 0x198   : > { %v629_v58 = vadd.f32 %v556_v54, %v324_v50  ;;  %v645_v59 = vadd.f32 %v596_v55, %v340_v51  ;;  %v558_v60 = vpop.f32.mrb[5].mxu0  ;;  %v598_v61 = vpop.f32.mrb[5].mxu1 }
 0x199   : > { %v630_v0 = vadd.f32 %v558_v60, %v325_v52  ;;  %v646_v1 = vadd.f32 %v598_v61, %v341_v53  ;;  %v560_v2 = vpop.f32.mrb[6].mxu0  ;;  %v600_v3 = vpop.f32.mrb[6].mxu1  ;;  %v725_v60 = vld [vmem:[%s279_s8] sm:$0x3] (!%p1023_p0) }
 0x19a   : > { %661 = vst [vmem:[#allocation2 + $0x20] sm:$0xff] %v629_v58  ;;  %677 = vst [vmem:[#allocation2 + $0xa0] sm:$0xff] %v645_v59  ;;  %v631_v4 = vadd.f32 %v560_v2, %v326_v56  ;;  %v647_v5 = vadd.f32 %v600_v3, %v342_v57  ;;  %v562_v6 = vpop.f32.mrb[7].mxu0  ;;  %v602_v7 = vpop.f32.mrb[7].mxu1  ;;  %v727_v58 = vlaneseq (!%p1023_p0)  ;;  %v693_v61 = vld [vmem:[#allocation2] sm:$0xff] (!%p1023_p0) }
 0x19b   : > { %662 = vst [vmem:[#allocation2 + $0x28] sm:$0xff] %v630_v0  ;;  %678 = vst [vmem:[#allocation2 + $0xa8] sm:$0xff] %v646_v1  ;;  %v632_v8 = vadd.f32 %v562_v6, %v327_v62  ;;  %v648_v9 = vadd.f32 %v602_v7, %v343_v63  ;;  %v694_v63 = vld [vmem:[#allocation2 + $0x8] sm:$0xff] (!%p1023_p0)  ;;  %v695_v1 = vld [vmem:[#allocation2 + $0x10] sm:$0xff] (!%p1023_p0) }
 0x19c   : > { %663 = vst [vmem:[#allocation2 + $0x30] sm:$0xff] %v631_v4  ;;  %679 = vst [vmem:[#allocation2 + $0xb0] sm:$0xff] %v647_v5  ;;  %v728_v59 = vshrl.u32 (!%p1023_p0), %v727_v58, 7  ;;  %v696_v2 = vld [vmem:[#allocation2 + $0x18] sm:$0xff] (!%p1023_p0) }
 0x19d   : > { %664 = vst [vmem:[#allocation2 + $0x38] sm:$0xff] %v632_v8  ;;  %680 = vst [vmem:[#allocation2 + $0xb8] sm:$0xff] %v648_v9 }
 0x19e   : > { %v729_v62 = vsub.s32 (!%p1023_p0), 0, %v728_v59  ;;  %v733_v0 = vsub.s32 (!%p1023_p0), 1, %v728_v59 }
 0x19f   : > { %v566_v14 = vpop.f32.mrb[8].mxu0  ;;  %v606_v15 = vpop.f32.mrb[8].mxu1 }
 0x1a0   : > { %v633_v18 = vadd.f32 %v566_v14, %v328_v10  ;;  %v649_v19 = vadd.f32 %v606_v15, %v344_v11  ;;  %v568_v20 = vpop.f32.mrb[9].mxu0  ;;  %v608_v21 = vpop.f32.mrb[9].mxu1  ;;  %v1851_v4 = vrot.slane (!%p1023_p0), %v725_v60, %v729_v62  ;;  %v1853_v5 = vrot.slane (!%p1023_p0), %v725_v60, %v733_v0 }
 0x1a1   : > { %v634_v24 = vadd.f32 %v568_v20, %v329_v12  ;;  %v650_v25 = vadd.f32 %v608_v21, %v345_v13  ;;  %v570_v26 = vpop.f32.mrb[10].mxu0  ;;  %v610_v27 = vpop.f32.mrb[10].mxu1  ;;  %v697_v3 = vld [vmem:[#allocation2 + $0x20] sm:$0xff] (!%p1023_p0) }
 0x1a2   : > { %665 = vst [vmem:[#allocation2 + $0x40] sm:$0xff] %v633_v18  ;;  %681 = vst [vmem:[#allocation2 + $0xc0] sm:$0xff] %v649_v19  ;;  %v635_v28 = vadd.f32 %v570_v26, %v330_v16  ;;  %v651_v29 = vadd.f32 %v610_v27, %v346_v17  ;;  %v572_v30 = vpop.f32.mrb[11].mxu0  ;;  %v612_v31 = vpop.f32.mrb[11].mxu1  ;;  %v698_v6 = vld [vmem:[#allocation2 + $0x28] sm:$0xff] (!%p1023_p0)  ;;  %v737_v9 = vadd.f32 (!%p1023_p0), %v1851_v4, %v693_v61 }
 0x1a3   : > { %666 = vst [vmem:[#allocation2 + $0x48] sm:$0xff] %v634_v24  ;;  %682 = vst [vmem:[#allocation2 + $0xc8] sm:$0xff] %v650_v25  ;;  %v636_v32 = vadd.f32 %v572_v30, %v331_v22  ;;  %v652_v33 = vadd.f32 %v612_v31, %v347_v23  ;;  %v699_v7 = vld [vmem:[#allocation2 + $0x30] sm:$0xff] (!%p1023_p0)  ;;  %v738_v10 = vadd.f32 (!%p1023_p0), %v1853_v5, %v694_v63 }
 0x1a4   : > { %667 = vst [vmem:[#allocation2 + $0x50] sm:$0xff] %v635_v28  ;;  %683 = vst [vmem:[#allocation2 + $0xd0] sm:$0xff] %v651_v29  ;;  %v700_v8 = vld [vmem:[#allocation2 + $0x38] sm:$0xff] (!%p1023_p0)  ;;  %v739_v11 = vadd.f32 (!%p1023_p0), %v1851_v4, %v695_v1  ;;  %v740_v12 = vadd.f32 (!%p1023_p0), %v1853_v5, %v696_v2  ;;  %v741_v16 = vadd.f32 (!%p1023_p0), %v1851_v4, %v697_v3  ;;  %v769_v23 = vmax.f32 (!%p1023_p0), %v737_v9, 0.0 }
 0x1a5   : > { %668 = vst [vmem:[#allocation2 + $0x58] sm:$0xff] %v636_v32  ;;  %684 = vst [vmem:[#allocation2 + $0xd8] sm:$0xff] %v652_v33  ;;  %v742_v17 = vadd.f32 (!%p1023_p0), %v1853_v5, %v698_v6  ;;  %v743_v18 = vadd.f32 (!%p1023_p0), %v1851_v4, %v699_v7  ;;  %v744_v19 = vadd.f32 (!%p1023_p0), %v1853_v5, %v700_v8  ;;  %v770_v24 = vmax.f32 (!%p1023_p0), %v738_v10, 0.0 }
 0x1a6   : > { %v771_v25 = vmax.f32 (!%p1023_p0), %v739_v11, 0.0  ;;  %v772_v26 = vmax.f32 (!%p1023_p0), %v740_v12, 0.0  ;;  %v773_v29 = vmax.f32 (!%p1023_p0), %v741_v16, 0.0  ;;  %801 = vst [vmem:[%s1810_s22] sm:$0xff] (!%p1023_p0), %v769_v23 }
 0x1a7   : > { %v576_v38 = vpop.f32.mrb[12].mxu0  ;;  %v616_v39 = vpop.f32.mrb[12].mxu1  ;;  %692 = sbr.rel (%p1023_p0) target bundleno = 444 (0x1bc), region = 48  ;;  %v774_v30 = vmax.f32 (!%p1023_p0), %v742_v17, 0.0  ;;  %v775_v31 = vmax.f32 (!%p1023_p0), %v743_v18, 0.0  ;;  %v776_v32 = vmax.f32 (!%p1023_p0), %v744_v19, 0.0 }
 0x1a8   : > { %v637_v42 = vadd.f32 %v576_v38, %v332_v34  ;;  %v653_v43 = vadd.f32 %v616_v39, %v348_v35  ;;  %v578_v44 = vpop.f32.mrb[13].mxu0  ;;  %v618_v45 = vpop.f32.mrb[13].mxu1  ;;  %802 = vst [vmem:[%s1810_s22 + $0x8] sm:$0xff] (!%p1023_p0), %v770_v24  ;;  %803 = vst [vmem:[%s1810_s22 + $0x10] sm:$0xff] (!%p1023_p0), %v771_v25  ;;  %v710_v38 = vld [vmem:[#allocation2 + $0x88] sm:$0xff] (!%p1023_p0)  ;;  %v711_v39 = vld [vmem:[#allocation2 + $0x90] sm:$0xff] (!%p1023_p0) }
 0x1a9   : > { %v638_v48 = vadd.f32 %v578_v44, %v333_v36  ;;  %v654_v49 = vadd.f32 %v618_v45, %v349_v37  ;;  %v580_v50 = vpop.f32.mrb[14].mxu0  ;;  %v620_v51 = vpop.f32.mrb[14].mxu1  ;;  %v701_v13 = vld [vmem:[#allocation2 + $0x40] sm:$0xff] (!%p1023_p0)  ;;  %804 = vst [vmem:[%s1810_s22 + $0x18] sm:$0xff] (!%p1023_p0), %v772_v26  ;;  %805 = vst [vmem:[%s1810_s22 + $0x20] sm:$0xff] (!%p1023_p0), %v773_v29  ;;  %v712_v44 = vld [vmem:[#allocation2 + $0x98] sm:$0xff] (!%p1023_p0)  ;;  %v754_v58 = vadd.f32 (!%p1023_p0), %v1853_v5, %v710_v38 }
 0x1aa   : > { %669 = vst [vmem:[#allocation2 + $0x60] sm:$0xff] %v637_v42  ;;  %685 = vst [vmem:[#allocation2 + $0xe0] sm:$0xff] %v653_v43  ;;  %v639_v52 = vadd.f32 %v580_v50, %v334_v40  ;;  %v655_v53 = vadd.f32 %v620_v51, %v350_v41  ;;  %v582_v54 = vpop.f32.mrb[15].mxu0  ;;  %v622_v55 = vpop.f32.mrb[15].mxu1  ;;  %v702_v14 = vld [vmem:[#allocation2 + $0x48] sm:$0xff] (!%p1023_p0)  ;;  %v745_v33 = vadd.f32 (!%p1023_p0), %v1851_v4, %v701_v13  ;;  %v709_v37 = vld [vmem:[#allocation2 + $0x80] sm:$0xff] (!%p1023_p0) }
 0x1ab   : > { %670 = vst [vmem:[#allocation2 + $0x68] sm:$0xff] %v638_v48  ;;  %686 = vst [vmem:[#allocation2 + $0xe8] sm:$0xff] %v654_v49  ;;  %v640_v56 = vadd.f32 %v582_v54, %v335_v46  ;;  %v656_v57 = vadd.f32 %v622_v55, %v351_v47  ;;  %v703_v15 = vld [vmem:[#allocation2 + $0x50] sm:$0xff] (!%p1023_p0)  ;;  %v746_v34 = vadd.f32 (!%p1023_p0), %v1853_v5, %v702_v14  ;;  %v713_v45 = vld [vmem:[#allocation2 + $0xa0] sm:$0xff] (!%p1023_p0)  ;;  %v786_v10 = vmax.f32 (!%p1023_p0), %v754_v58, 0.0 }
 0x1ac   : > { %671 = vst [vmem:[#allocation2 + $0x70] sm:$0xff] %v639_v52  ;;  %687 = vst [vmem:[#allocation2 + $0xf0] sm:$0xff] %v655_v53  ;;  %v704_v20 = vld [vmem:[#allocation2 + $0x58] sm:$0xff] (!%p1023_p0)  ;;  %v747_v35 = vadd.f32 (!%p1023_p0), %v1851_v4, %v703_v15  ;;  %v714_v46 = vld [vmem:[#allocation2 + $0xa8] sm:$0xff] (!%p1023_p0)  ;;  %v777_v47 = vmax.f32 (!%p1023_p0), %v745_v33, 0.0  ;;  %v755_v59 = vadd.f32 (!%p1023_p0), %v1851_v4, %v711_v39  ;;  %v756_v60 = vadd.f32 (!%p1023_p0), %v1853_v5, %v712_v44 }
 0x1ad   : > { %672 = vst [vmem:[#allocation2 + $0x78] sm:$0xff] %v640_v56  ;;  %688 = vst [vmem:[#allocation2 + $0xf8] sm:$0xff] %v656_v57  ;;  %v748_v36 = vadd.f32 (!%p1023_p0), %v1853_v5, %v704_v20  ;;  %v778_v48 = vmax.f32 (!%p1023_p0), %v746_v34, 0.0  ;;  %v715_v51 = vld [vmem:[#allocation2 + $0xb0] sm:$0xff] (!%p1023_p0)  ;;  %v716_v52 = vld [vmem:[#allocation2 + $0xb8] sm:$0xff] (!%p1023_p0)  ;;  %v753_v57 = vadd.f32 (!%p1023_p0), %v1851_v4, %v709_v37  ;;  %v757_v0 = vadd.f32 (!%p1023_p0), %v1851_v4, %v713_v45 }
 0x1ae   : > { %806 = vst [vmem:[%s1810_s22 + $0x28] sm:$0xff] %v774_v30  ;;  %807 = vst [vmem:[%s1810_s22 + $0x30] sm:$0xff] %v775_v31  ;;  %v779_v49 = vmax.f32 %v747_v35, 0.0  ;;  %v717_v61 = vld [vmem:[#allocation2 + $0xc0] sm:$0xff]  ;;  %v718_v62 = vld [vmem:[#allocation2 + $0xc8] sm:$0xff]  ;;  %v758_v1 = vadd.f32 %v1853_v5, %v714_v46  ;;  %v759_v2 = vadd.f32 %v1851_v4, %v715_v51  ;;  %v760_v3 = vadd.f32 %v1853_v5, %v716_v52 }
 0x1af   : > { %808 = vst [vmem:[%s1810_s22 + $0x38] sm:$0xff] %v776_v32  ;;  %v780_v50 = vmax.f32 %v748_v36, 0.0  ;;  %809 = vst [vmem:[%s1810_s22 + $0x40] sm:$0xff] %v777_v47  ;;  %v719_v63 = vld [vmem:[#allocation2 + $0xd0] sm:$0xff]  ;;  %v720_v6 = vld [vmem:[#allocation2 + $0xd8] sm:$0xff]  ;;  %v785_v9 = vmax.f32 %v753_v57, 0.0  ;;  %v761_v19 = vadd.f32 %v1851_v4, %v717_v61  ;;  %v762_v20 = vadd.f32 %v1853_v5, %v718_v62 }
 0x1b0   : > { %810 = vst [vmem:[%s1810_s22 + $0x48] sm:$0xff] %v778_v48  ;;  %811 = vst [vmem:[%s1810_s22 + $0x50] sm:$0xff] %v779_v49  ;;  %v787_v11 = vmax.f32 %v755_v59, 0.0  ;;  %v788_v12 = vmax.f32 %v756_v60, 0.0  ;;  %v789_v15 = vmax.f32 %v757_v0, 0.0  ;;  %v790_v16 = vmax.f32 %v758_v1, 0.0 }
 0x1b1   : > { %v705_v21 = vld [vmem:[#allocation2 + $0x60] sm:$0xff]  ;;  %812 = vst [vmem:[%s1810_s22 + $0x58] sm:$0xff] %v780_v50  ;;  %v791_v17 = vmax.f32 %v759_v2, 0.0  ;;  %v792_v18 = vmax.f32 %v760_v3, 0.0  ;;  %817 = vst [vmem:[%s1810_s22 + $0x80] sm:$0xff] %v785_v9 }
 0x1b2   : > { %v706_v22 = vld [vmem:[#allocation2 + $0x68] sm:$0xff]  ;;  %v749_v40 = vadd.f32 %v1851_v4, %v705_v21  ;;  %v721_v7 = vld [vmem:[#allocation2 + $0xe0] sm:$0xff]  ;;  %818 = vst [vmem:[%s1810_s22 + $0x88] sm:$0xff] %v786_v10  ;;  %819 = vst [vmem:[%s1810_s22 + $0x90] sm:$0xff] %v787_v11  ;;  %v763_v21 = vadd.f32 %v1851_v4, %v719_v63 }
 0x1b3   : > { %v707_v27 = vld [vmem:[#allocation2 + $0x70] sm:$0xff]  ;;  %v750_v41 = vadd.f32 %v1853_v5, %v706_v22  ;;  %v722_v8 = vld [vmem:[#allocation2 + $0xe8] sm:$0xff]  ;;  %820 = vst [vmem:[%s1810_s22 + $0x98] sm:$0xff] %v788_v12  ;;  %v764_v22 = vadd.f32 %v1853_v5, %v720_v6  ;;  %821 = vst [vmem:[%s1810_s22 + $0xa0] sm:$0xff] %v789_v15  ;;  %v765_v23 = vadd.f32 %v1851_v4, %v721_v7 }
 0x1b4   : > { %v708_v28 = vld [vmem:[#allocation2 + $0x78] sm:$0xff]  ;;  %v751_v42 = vadd.f32 %v1851_v4, %v707_v27  ;;  %v781_v53 = vmax.f32 %v749_v40, 0.0  ;;  %v723_v13 = vld [vmem:[#allocation2 + $0xf0] sm:$0xff]  ;;  %822 = vst [vmem:[%s1810_s22 + $0xa8] sm:$0xff] %v790_v16  ;;  %823 = vst [vmem:[%s1810_s22 + $0xb0] sm:$0xff] %v791_v17  ;;  %v766_v24 = vadd.f32 %v1853_v5, %v722_v8  ;;  %v793_v27 = vmax.f32 %v761_v19, 0.0 }
 0x1b5   : > { %v752_v43 = vadd.f32 %v1853_v5, %v708_v28  ;;  %v782_v54 = vmax.f32 %v750_v41, 0.0  ;;  %v724_v14 = vld [vmem:[#allocation2 + $0xf8] sm:$0xff]  ;;  %824 = vst [vmem:[%s1810_s22 + $0xb8] sm:$0xff] %v792_v18  ;;  %v767_v25 = vadd.f32 %v1851_v4, %v723_v13  ;;  %v794_v28 = vmax.f32 %v762_v20, 0.0 }
 0x1b6   : > { %v783_v55 = vmax.f32 %v751_v42, 0.0  ;;  %813 = vst [vmem:[%s1810_s22 + $0x60] sm:$0xff] %v781_v53  ;;  %v768_v26 = vadd.f32 %v1853_v5, %v724_v14  ;;  %v795_v29 = vmax.f32 %v763_v21, 0.0  ;;  %v796_v30 = vmax.f32 %v764_v22, 0.0  ;;  %825 = vst [vmem:[%s1810_s22 + $0xc0] sm:$0xff] %v793_v27 }
 0x1b7   : > { %v784_v56 = vmax.f32 %v752_v43, 0.0  ;;  %814 = vst [vmem:[%s1810_s22 + $0x68] sm:$0xff] %v782_v54  ;;  %v797_v31 = vmax.f32 %v765_v23, 0.0  ;;  %v798_v32 = vmax.f32 %v766_v24, 0.0  ;;  %v799_v33 = vmax.f32 %v767_v25, 0.0  ;;  %826 = vst [vmem:[%s1810_s22 + $0xc8] sm:$0xff] %v794_v28 }
 0x1b8   : > { %815 = vst [vmem:[%s1810_s22 + $0x70] sm:$0xff] %v783_v55  ;;  %v800_v34 = vmax.f32 %v768_v26, 0.0  ;;  %827 = vst [vmem:[%s1810_s22 + $0xd0] sm:$0xff] %v795_v29 }
 0x1b9   : > { %816 = vst [vmem:[%s1810_s22 + $0x78] sm:$0xff] %v784_v56  ;;  %828 = vst [vmem:[%s1810_s22 + $0xd8] sm:$0xff] %v796_v30 }
 0x1ba   : > { %829 = vst [vmem:[%s1810_s22 + $0xe0] sm:$0xff] %v797_v31  ;;  %830 = vst [vmem:[%s1810_s22 + $0xe8] sm:$0xff] %v798_v32 }
 0x1bb   : > { %831 = vst [vmem:[%s1810_s22 + $0xf0] sm:$0xff] %v799_v33  ;;  %832 = vst [vmem:[%s1810_s22 + $0xf8] sm:$0xff] %v800_v34 }
 0x1bc PF: > { %s2069_s29 = sld [smem:[#allocation14_spill]]  ;;  %s2070_s18 = sld [smem:[#allocation18_spill]] }
 0x1bd   : > { %s850_s21 = sshll.u32 %s1810_s22, 4  ;;  %s2071_s9 = sld [smem:[#allocation22_spill]]  ;;  %s1922_s21 = int_to_ptr.vmem [resolvable:$true] %s850_s21 }
 0x1be   : > { %s1931_s2 = scalar_lea.sflag [#allocation5], %s270_s26  ;;  %s1299_s11 = scalar_lea.vmem %s1922_s21, 4096 }
 0x1bf   : > { %p1300_p3 = scmp.ne.s32.totalorder %s1922_s21, %s1299_s11 }
 0x1c2   : > { %s1033_s10 = sshll.u32 %s2069_s29, 6  ;;  %p2072_p4 = scmp.ne.s32.totalorder %s2070_s18, 0 }
 0x1c3   : > { %s847_s30 = sadd.s32 %s1033_s10, %s1798_s3  ;;  %s1476_s3 = smov [#allocation8]  }
 0x1c4   : > { %s1028_s6 = sshll.u32 %s847_s30, 7  ;;  %p1301_p11 = pnand %p1300_p3, %p2072_p4 }
 0x1c5   : > { %s1927_s4 = scalar_lea.hbm %s2071_s9, %s1028_s6  ;;  %s1303_s22 = sshll.u32 %s1476_s3, 4  ;;  %s1304_s22 = int_to_ptr.vmem [resolvable:$false] %s1303_s22 }
 0x1c6   : > { %p1302_p10 = pneg %p1301_p11  ;;  %s1305_s5 = scalar_lea.vmem %s1304_s22, 8192 }
 0x1c7   : > { %p1306_p1 = scmp.lt.s32.totalorder %s1922_s21, %s1304_s22  ;;  %p1307_p8 = scmp.lt.s32.totalorder %s1305_s5, %s1299_s11 }
 0x1c9   : > { %p1308_p5 = por %p1307_p8, %p1306_p1 }
 0x1cb   : > { %p1309_p7 = pnand %p1308_p5, %p1302_p10 }
 0x1cd   : > { %1312 = shalt.err (!%p1309_p7)
}
 0x1ce   : > { %s1313_s26 = scalar_lea.hbm %s1927_s4, 4096  ;;  %s1317_s30 = scalar_lea.hbm %s2071_s9, 16384 }
 0x1cf   : > { %p1314_p9 = scmp.ne.s32.totalorder %s1927_s4, %s1313_s26  ;;  %p1318_p2 = scmp.lt.u32.totalorder %s1927_s4, %s2071_s9 }
 0x1d0   : > { %p1319_p13 = scmp.lt.u32.totalorder %s1317_s30, %s1313_s26  ;;  %p1321_p3 = scmp.lt.u32.totalorder %s1313_s26, %s1927_s4 }
 0x1d1   : > { %p1315_p12 = pnand %p1314_p9, %p2072_p4 }
 0x1d2   : > { %p1320_p0 = por %p1319_p13, %p1318_p2 }
 0x1d3   : > { %p1316_p6 = pneg %p1315_p12 }
 0x1d4   : > { %p1322_p11 = por %p1321_p3, %p1320_p0 }
 0x1d6   : > { %p1323_p10 = pnand %p1322_p11, %p1316_p6 }
 0x1d8   : > { %1326 = shalt.err (!%p1323_p10)
}
 0x1d9   : > { %s1477_s8 = smov 256   ;;  %s1478_s11 = smov 512  }
 0x1da   : > { %s1479_s3 = smov 16  }
 0x1db   : > { %1054 = dma.vmem_to_hbm [thread:$0]  (%p2072_p4), %s1922_s21, 4096, %s1927_s4, %s1931_s2, %s1477_s8, %s1478_s11, %s1479_s3  }
 0x1dc PF: > { %p1068_p1 = scmp.ge.s32.totalorder %s1465_s27, 2  ;;  %s865_s22 = sand.u32 1, %s1405_s12  }
 0x1dd   : > { %p2073_p8 = scmp.ne.s32.totalorder %s2058_s7, 0  ;;  %s866_s5 = scalar_lea.sflag [#allocation5], %s865_s22 }
 0x1df   : > { %p1064_p5 = pnand %p1068_p1, %p2073_p8 }
 0x1e1   : > { %1400 = dma.done.wait (!%p1064_p5), %s866_s5, 4096  }
 0x1e2   : > { %1402 = vsyncadd (!%p1064_p5), %s866_s5, 4294963200  ;;  %s22_s27 = sadd.s32 1, %s1465_s27   ;;  %s2075_s7 = sld [smem:[#allocation15_spill]] }
 0x1e3   : > { %p1960_p7 = scmp.ge.s32.totalorder %s22_s27, 10   ;;  %s2076_s4 = sld [smem:[#allocation16_spill]] }
 0x1e4   : > { %s2077_s2 = sld [smem:[#allocation17_spill]]  ;;  %s2078_s29 = sld [smem:[#allocation19_spill]] }
 0x1e5   : > { %s2079_s12 = smov %s1409_s13  ;;  %s2081_s13 = smov %s1413_s14 }
 0x1e6   : > { %s2082_s14 = smov %s1728_s28  ;;  %s2083_s15 = smov %s1421_s16 }
 0x1e7   : > { %s2084_s16 = smov %s1425_s17  ;;  %s2085_s17 = smov %s1714_s23 }
 0x1e8   : > { %s2086_s18 = smov %s1433_s19  ;;  %s2087_s19 = smov %s1437_s20 }
 0x1e9   : > { %s2088_s20 = smov %s1725_s0  ;;  %s2089_s21 = smov %s1453_s24 }
 0x1ea   : > { %s2090_s22 = smov %s1457_s25  ;;  %s2091_s23 = smov %s2075_s7 }
 0x1eb   : > { %s2092_s24 = smov %s2076_s4  ;;  %s2093_s25 = smov %s2077_s2 }
 0x1ec   : > { %s2094_s26 = smov %s2078_s29  ;;  %21 = sbr.rel (!%p1960_p7) target bundleno = 17 (0x11), region = 101 }
 0x1f3   :  { %871 = vsyncpa [#allocation4], 1 }
 0x1f4   :  { %873 = vsyncpa [#allocation4 + $0x1], 1 }
 0x1f5   :  { %874 = vsyncpa [#allocation7], 1 }
 0x1f6   :  { %876 = vsyncpa [#allocation7 + $0x1], 1 }
 0x1f7   :  { %877 = vsyncpa [#allocation5], 1 }
 0x1f8   :  { %879 = vsyncpa [#allocation5 + $0x1], 1 }

</bundles_post_ra>
